<compile_context>
chip_gen: v7x
topology: tpu7x:2x2x1
jax: 0.10.0
libtpu: 0.0.40
codegen_flags: <defaults>
</compile_context>

<pallas_src>
import jax
import jax.numpy as jnp
from jax.experimental import pallas as pl
from jax.experimental.pallas import tpu as pltpu


# ----------------------------------------------------------------------------
# Kernel: per-row logsumexp of (logits + log_prior)
# ----------------------------------------------------------------------------
def _balanced_softmax_lse_kernel(logits_ref, log_spc_ref, lse_ref):
    # logits_ref:  (TB, C)  native dtype (f32 or bf16), streamed / double-buffered
    # log_spc_ref: (1, C)   f32, resident log prior
    # lse_ref:     (TB, 1)  f32, per-row logsumexp of adjusted logits
    adj = logits_ref[...].astype(jnp.float32) + log_spc_ref[...]     # widen in-vreg
    m = jnp.max(adj, axis=-1, keepdims=True)                         # (TB, 1)
    z = adj - m                                                       # single shifted temp
    lse_ref[...] = m + jnp.log(jnp.sum(jnp.exp(z), axis=-1, keepdims=True))


# ----------------------------------------------------------------------------
# Tile sizing (VMEM-model based, no artificial row cap)
# ----------------------------------------------------------------------------
def _choose_block_rows(batch, num_classes, itemsize, vmem_budget_bytes=40 << 20):
    """Pick the row-tile size TB.

    VMEM model per row of the tile:
      2 double-buffered native-dtype logits blocks  -> 2 * C * itemsize
      ~2 full-width f32 temps (adj / z materialization) -> 2 * C * 4
    Sized against ~40 MiB so the total stays under the 48 MiB vmem limit
    (and under v7x's 64 MiB physical VMEM) with headroom.
    """
    sub = 16 if itemsize == 2 else 8               # bf16 packs 16 rows / vreg group
    per_row = max(1, num_classes * (2 * itemsize + 2 * 4))
    rows = max(sub, vmem_budget_bytes // per_row)
    tb = (rows // sub) * sub

    # Keep >= 2 grid steps when the batch allows it so the "parallel" batch
    # axis can shard across v7x's two TensorCores.
    if batch > sub:
        half = -(-batch // 2)                      # ceil(batch / 2)
        half = ((half + sub - 1) // sub) * sub
        tb = min(tb, half)

    batch_ceil = ((batch + sub - 1) // sub) * sub
    tb = min(tb, batch_ceil)
    return int(max(sub, tb))


# ----------------------------------------------------------------------------
# Wrapper
# ----------------------------------------------------------------------------
def balanced_softmax_loss(y, logits, sample_per_class, reduction="mean",
                          block_rows=None):
    """Balanced softmax loss (FedROD).

    y:                 (B,)   integer labels
    logits:            (B, C) float (f32 or bf16 -- kept in native dtype on HBM)
    sample_per_class:  (C,)   counts per class
    reduction:         'mean' or 'sum' (as in the PyTorch module)
    """
    if reduction not in ("mean", "sum"):
        raise ValueError(f"unsupported reduction: {reduction!r}")

    B, C = logits.shape

    # Spec-faithful prior: counts.type_as(logits).log(), then widen to f32.
    log_spc = jnp.log(sample_per_class.astype(logits.dtype)).astype(
        jnp.float32).reshape(1, C)

    itemsize = jnp.dtype(logits.dtype).itemsize
    tb = block_rows if block_rows is not None else _choose_block_rows(B, C, itemsize)
    grid = (pl.cdiv(B, tb),)

    # TODO(synk): if a trace shows exposed DMA for very small C, sweep
    # pipeline_mode=pl.Buffered(3) on the logits BlockSpec.
    lse = pl.pallas_call(
        _balanced_softmax_lse_kernel,
        out_shape=jax.ShapeDtypeStruct((B, 1), jnp.float32),
        grid=grid,
        in_specs=[
            pl.BlockSpec((tb, C), lambda i: (i, 0)),   # logits, streamed
            pl.BlockSpec((1, C), lambda i: (0, 0)),    # log prior, resident
        ],
        out_specs=pl.BlockSpec((tb, 1), lambda i: (i, 0)),
        compiler_params=pltpu.CompilerParams(
            dimension_semantics=("parallel",),         # megacore-shardable batch axis
            vmem_limit_bytes=48 * 1024 * 1024,
        ),
    )(logits, log_spc)[:, 0]                            # (B,)

    # Target adjusted logit hoisted out of the kernel: reads only B gathered
    # logit elements + B prior elements from HBM (no full-tile third pass).
    # TODO(synk): out-of-range labels are clamped by take_along_axis instead
    # of erroring like torch.nn.functional.cross_entropy.
    y_i = y.astype(jnp.int32)
    tgt = jnp.take_along_axis(logits, y_i[:, None], axis=-1)[:, 0].astype(jnp.float32)
    tgt = tgt + log_spc[0, y_i]

    per_sample = lse - tgt
    total = jnp.sum(per_sample)
    if reduction == "mean":
        return total / jnp.float32(B)
    return total


# ----------------------------------------------------------------------------
# Reference + test
# ----------------------------------------------------------------------------
def _reference(y, logits, spc, reduction="mean"):
    adj = logits.astype(jnp.float32) + jnp.log(spc.astype(jnp.float32))[None, :]
    lse = jax.nn.logsumexp(adj, axis=-1)
    tgt = jnp.take_along_axis(adj, y[:, None].astype(jnp.int32), axis=-1)[:, 0]
    per = lse - tgt
    return jnp.mean(per) if reduction == "mean" else jnp.sum(per)


if __name__ == "__main__":
    key = jax.random.PRNGKey(0)
    k1, k2, k3, k4, k5, k6 = jax.random.split(key, 6)

    # --- small f32 case (matches the module's typical usage) ----------------
    B, C = 8, 32
    logits = jax.random.normal(k1, (B, C), dtype=jnp.float32)
    y = jax.random.randint(k2, (B,), 0, C, dtype=jnp.int32)
    sample_per_class = jnp.arange(1, C + 1, dtype=jnp.float32)  # long-tailed prior

    loss_mean = jax.block_until_ready(
        balanced_softmax_loss(y, logits, sample_per_class, reduction="mean"))
    loss_sum = jax.block_until_ready(
        balanced_softmax_loss(y, logits, sample_per_class, reduction="sum"))
    ref_mean = _reference(y, logits, sample_per_class, "mean")
    ref_sum = _reference(y, logits, sample_per_class, "sum")
    assert jnp.allclose(loss_mean, ref_mean, rtol=1e-5, atol=1e-5), (loss_mean, ref_mean)
    assert jnp.allclose(loss_sum, ref_sum, rtol=1e-5, atol=1e-5), (loss_sum, ref_sum)

    # --- multi-tile grid with a remainder tile (B % TB != 0), bf16 logits ---
    B2, C2 = 20, 128
    logits2 = jax.random.normal(k3, (B2, C2), dtype=jnp.float32).astype(jnp.bfloat16)
    y2 = jax.random.randint(k4, (B2,), 0, C2, dtype=jnp.int32)
    spc2 = jnp.linspace(1.0, 50.0, C2, dtype=jnp.float32)

    loss2 = jax.block_until_ready(
        balanced_softmax_loss(y2, logits2, spc2, reduction="mean", block_rows=16))
    ref2 = _reference(y2, logits2, spc2, "mean")
    assert jnp.allclose(loss2, ref2, rtol=2e-2, atol=2e-2), (loss2, ref2)

    # --- auto tile sizing path: exercises the >=2-grid-step clamp -----------
    B3, C3 = 256, 512
    logits3 = jax.random.normal(k5, (B3, C3), dtype=jnp.float32)
    y3 = jax.random.randint(k6, (B3,), 0, C3, dtype=jnp.int32)
    spc3 = jnp.linspace(1.0, 200.0, C3, dtype=jnp.float32)

    loss3 = jax.block_until_ready(
        balanced_softmax_loss(y3, logits3, spc3, reduction="mean"))
    ref3 = _reference(y3, logits3, spc3, "mean")
    assert jnp.allclose(loss3, ref3, rtol=1e-5, atol=1e-5), (loss3, ref3)

    print("KERNEL_OK")
</pallas_src>

<mosaic_0001>
module attributes {stable_mosaic.version = 11 : i64} {
  func.func @_balanced_softmax_lse_kernel(%arg0: i32, %arg1: memref<8x32xf32, #tpu.memory_space<vmem>>, %arg2: memref<1x32xf32, #tpu.memory_space<vmem>>, %arg3: memref<8x1xf32, #tpu.memory_space<vmem>>) attributes {dimension_semantics = [#tpu.dimension_semantics<parallel>], iteration_bounds = array<i64: 1>, scalar_prefetch = 0 : i64, scratch_operands = 0 : i64, tpu.core_type = #tpu.core_type<tc>, window_params = [{transform_indices = @transform_0, window_bounds = array<i64: 8, 32>}, {pipeline_mode = #tpu.pipeline_mode<synchronous>, transform_indices = @transform_1, window_bounds = array<i64: 1, 32>}, {transform_indices = @transform_2, window_bounds = array<i64: 8, 1>}]} {
    %c0 = arith.constant 0 : index
    %c0_0 = arith.constant 0 : index
    %0 = vector.load %arg1[%c0, %c0_0] : memref<8x32xf32, #tpu.memory_space<vmem>>, vector<8x32xf32>
    %c0_1 = arith.constant 0 : index
    %c0_2 = arith.constant 0 : index
    %1 = vector.load %arg2[%c0_1, %c0_2] : memref<1x32xf32, #tpu.memory_space<vmem>>, vector<1x32xf32>
    %2 = vector.broadcast %1 : vector<1x32xf32> to vector<8x32xf32>
    %3 = arith.addf %0, %2 : vector<8x32xf32>
    %cst = arith.constant dense<0xFF800000> : vector<8xf32>
    %4 = vector.multi_reduction <maximumf>, %3, %cst [1] : vector<8x32xf32> to vector<8xf32>
    %5 = vector.shape_cast %4 : vector<8xf32> to vector<8x1xf32>
    %6 = vector.broadcast %5 : vector<8x1xf32> to vector<8x32xf32>
    %7 = arith.subf %3, %6 : vector<8x32xf32>
    %8 = math.exp %7 : vector<8x32xf32>
    %cst_3 = arith.constant dense<0.000000e+00> : vector<8xf32>
    %9 = vector.multi_reduction <add>, %8, %cst_3 [1] : vector<8x32xf32> to vector<8xf32>
    %10 = vector.shape_cast %9 : vector<8xf32> to vector<8x1xf32>
    %11 = math.log %10 : vector<8x1xf32>
    %12 = arith.addf %5, %11 : vector<8x1xf32>
    %c0_4 = arith.constant 0 : index
    %c0_5 = arith.constant 0 : index
    %13 = vector.load %arg3[%c0_4, %c0_5] : memref<8x1xf32, #tpu.memory_space<vmem>>, vector<8x1xf32>
    tpu.vector_store %arg3[%c0_4, %c0_5], %12 {strides = array<i32>} : memref<8x1xf32, #tpu.memory_space<vmem>>, vector<8x1xf32>,
    return
  }
  func.func @transform_0(%arg0: i32) -> (i32, i32) {
    %c0_i32 = arith.constant 0 : i32
    %c0_i32_0 = arith.constant 0 : i32
    return %arg0, %c0_i32 : i32, i32
  }
  func.func @transform_1(%arg0: i32) -> (i32, i32) {
    %c0_i32 = arith.constant 0 : i32
    %c0_i32_0 = arith.constant 0 : i32
    %c0_i32_1 = arith.constant 0 : i32
    return %c0_i32, %c0_i32_0 : i32, i32
  }
  func.func @transform_2(%arg0: i32) -> (i32, i32) {
    %c0_i32 = arith.constant 0 : i32
    %c0_i32_0 = arith.constant 0 : i32
    return %arg0, %c0_i32 : i32, i32
  }
}

</mosaic_0001>

<bundles_post_ra>
// kernel: tpu_custom_call.1
= control target key start
LH: loop header
LB: loop body
LE: loop exit
PB: predicated region body
PF: predicated region fallthrough
CT: control target
= control target key end

     0   :  { %7 = vsyncpa [#allocation3], 0  ;;  %s82_s9 = smov [#allocation2]   ;;  %s116_s0 = inlined_call_operand.hbm [shape: f32[8,32], index: 0, kind: input, shape index: {}]   ;;  %s117_s1 = inlined_call_operand.vmem [shape: f32[1,32], index: 1, kind: input, shape index: {}]   ;;  %s118_s2 = inlined_call_operand.vmem [shape: f32[8,1], index: 2, kind: output, shape index: {}]  }
   0x1   :  { %s14_s10 = sshll.u32 %s82_s9, 4  ;;  %s58_s13 = scalar_lea.hbm %s116_s0, 128  ;;  %s15_s10 = int_to_ptr.vmem [resolvable:$true] %s14_s10 }
   0x2   :  { %p59_p0 = scmp.ne.s32.totalorder %s116_s0, %s58_s13  ;;  %p62_p1 = scmp.lt.u32.totalorder %s58_s13, %s116_s0 }
   0x4   :  { %p64_p2 = pnand %p62_p1, %p59_p0 }
   0x6   :  { %67 = shalt.err (!%p64_p2)
}
   0x7   :  { %s68_s18 = scalar_lea.vmem %s15_s10, 128  ;;  %p73_p4 = scmp.lt.s32.totalorder %s15_s10, %s15_s10 }
   0x8   :  { %p69_p3 = scmp.ne.s32.totalorder %s15_s10, %s68_s18  ;;  %p74_p5 = scmp.lt.s32.totalorder %s68_s18, %s68_s18 }
   0xa   :  { %p75_p6 = por %p74_p5, %p73_p4 }
   0xc   :  { %p76_p7 = pnand %p75_p6, %p69_p3 }
   0xe   :  { %79 = shalt.err (!%p76_p7)
}
   0xf   :  { %17 = dma.hbm_to_vmem [thread:$0]  %s116_s0, 128, %s15_s10, [#allocation3]  }
  0x10   :  { %80 = dma.done.wait [#allocation3], 128  }
  0x11   :  { %81 = vsyncadd [#allocation3], 4294967168  ;;  %v23_v0 = vld [vmem:[#allocation2] sm:$0xff]  ;;  %vm32_vm0 = vcmask 261120   ;;  %vm45_vm1 = vcmask 7168  }
  0x12   :  { %v52_v1 = vld [vmem:[%s117_s1] ss:$0 sm:$0xff] }
  0x13   :  { %v31_v2 = vadd.f32 %v52_v1, %v23_v0 }
  0x15   :  { %v33_v3 = vsel %vm32_vm0, %v31_v2, -inf }
  0x16   :  { %34 = vmax.xlane.f32.xlu0 %v33_v3 }
  0xa3   :  { %v35_v4 = vpop.xlane.xlu0 %34 }
  0xa4   :  { %v36_v5 = vsub.f32 %v31_v2, %v35_v4 }
  0xa6   :  { %v37_v6 = vmul.f32 1.442695, %v36_v5 }
  0xa8   :  { %54 = vpow2.f32 %v37_v6 }
  0xb2   :  { %v55_v7 = vpop.eup %54 }
  0xb3   :  { %v39_v8 = vsel %vm32_vm0, %v55_v7, 0.0 }
  0xb4   :  { %40 = vadd.xlane.f32.xlu0 %v39_v8 }
 0x141   :  { %v41_v9 = vpop.xlane.xlu0 %40 }
 0x142   :  { %56 = vlog2.f32 %v41_v9 }
 0x14c   :  { %v57_v10 = vpop.eup %56 }
 0x14d   :  { %v43_v11 = vmul.f32 0.6931472, %v57_v10 }
 0x14f   :  { %v44_v12 = vadd.f32 %v43_v11, %v35_v4 }
 0x151   :  { %46 = vst.msk [vmem:[%s118_s2] sm:$0xff] %vm45_vm1, %v44_v12 }
 0x152   :  { %51 = vsyncpa [#allocation3], 1 }

</bundles_post_ra>
